<compile_context>
chip_gen: v7x
topology: tpu7x:2x2x1
jax: 0.10.0
libtpu: 0.0.40
codegen_flags: <defaults>
</compile_context>

<pallas_src>
import jax
import jax.numpy as jnp
from jax.experimental import pallas as pl
from jax.experimental.pallas import tpu as pltpu

IN_FEATURES = 12
HIDDEN = 128
OUT_FEATURES = 1

LANE = 128            # vreg lane width (minor dim)
MAX_TILE_B = 16384    # rows per grid step; ~17 MiB worst-case VMEM incl. buffers


def _round_up(n, m):
    return ((n + m - 1) // m) * m


def _cdiv(a, b):
    return -(-a // b)


def _mlp_kernel(xt_ref, w1_ref, b1_ref, w2_ref, b2_ref, o_ref):
    # ---- Layer 1 on the MXU: (128, 12) @ (12, TB) -> (128, TB), f32 accumulate ----
    # Both operands bf16 (cast once in the wrapper), batch already along lanes.
    h = jnp.dot(w1_ref[...], xt_ref[...], preferred_element_type=jnp.float32)
    h = jnp.maximum(h + b1_ref[...], 0.0)          # (128,1) column bias + ReLU (VPU)

    # ---- Layer 2: single-row matmul (1, 128) @ (128, TB) -> (1, TB) ----
    y = jnp.dot(w2_ref[...], h, preferred_element_type=jnp.float32)
    y = y + b2_ref[0]                              # scalar bias from SMEM

    # Numerically-stable sigmoid; divide replaced by an EUP reciprocal.
    e = jnp.exp(-jnp.abs(y))
    num = jnp.where(y >= 0.0, 1.0, e)
    sig = num * pl.reciprocal(1.0 + e, approx=True)

    o_ref[...] = sig[None].astype(o_ref.dtype)     # dense (1, 1, TB) store


def fully_connected_nn(x, w1, b1, w2, b2, *, tile_b=None):
    """x: (B, 12) f32; w1: (12, 128); b1: (1, 128); w2: (128, 1); b2: (1, 1)."""
    B, f_in = x.shape
    assert f_in == IN_FEATURES

    # --- batch tiling: 128-aligned tiles, VMEM-capped, >=2 tiles when possible so
    #     both v7x TensorCores are busy (no effect on single-TC v5e/v6e) ---
    if tile_b is None:
        b128 = _round_up(B, LANE)
        min_tiles = 2 if b128 >= 2 * LANE else 1
        num_tiles = max(min_tiles, _cdiv(b128, MAX_TILE_B))
        tile_b = _round_up(_cdiv(b128, num_tiles), LANE)
    assert tile_b > 0 and tile_b % LANE == 0, (
        "tile_b must be a positive multiple of 128 (lane-dense x / output blocks)")
    grid_b = _cdiv(B, tile_b)           # no jnp.pad: last block may be partial
    b_padded = grid_b * tile_b

    # --- parameter / input plumbing (wrapper-side, tiny except the x transpose) ---
    # x lane-dense + bf16: (B,12) -> (12,B).  Cast+transpose fuse into one XLA pass;
    # this is far cheaper than the 48-byte strided per-row DMA of the (B,12) layout.
    x_t = jnp.asarray(x, jnp.bfloat16).T                                    # (12, B)
    w1_t = jnp.asarray(w1, jnp.float32).reshape(IN_FEATURES, HIDDEN).T \
              .astype(jnp.bfloat16)                                         # (128, 12)
    b1_col = jnp.asarray(b1, jnp.float32).reshape(HIDDEN, 1)                # (128, 1)
    w2_row = jnp.asarray(w2, jnp.float32).reshape(HIDDEN, OUT_FEATURES).T   # (1, 128)
    b2_smem = jnp.asarray(b2, jnp.float32).reshape(1)                       # scalar

    out = pl.pallas_call(
        _mlp_kernel,
        out_shape=jax.ShapeDtypeStruct((grid_b, 1, tile_b), jnp.float32),
        grid_spec=pltpu.PrefetchScalarGridSpec(
            num_scalar_prefetch=0,
            grid=(grid_b,),
            in_specs=[
                # TODO(synk): try pipeline_mode=pl.Buffered(3) on x once profiled.
                pl.BlockSpec((IN_FEATURES, tile_b), lambda i: (0, i)),   # x^T tile
                pl.BlockSpec((HIDDEN, IN_FEATURES), lambda i: (0, 0)),   # W1 (out,in)
                pl.BlockSpec((HIDDEN, 1), lambda i: (0, 0)),             # b1 column
                pl.BlockSpec((OUT_FEATURES, HIDDEN), lambda i: (0, 0)),  # W2 row
                pl.BlockSpec(memory_space=pltpu.MemorySpace.SMEM),       # b2 scalar
            ],
            out_specs=pl.BlockSpec((1, 1, tile_b), lambda i: (i, 0, 0)),
        ),
        compiler_params=pltpu.CompilerParams(
            dimension_semantics=("parallel",),      # megacore-shard the batch axis
            vmem_limit_bytes=32 * 1024 * 1024,
        ),
    )(x_t, w1_t, b1_col, w2_row, b2_smem)

    # (grid, 1, tile_b) lane-dense slab -> (B, 1); row-major order == batch order.
    return out.reshape(b_padded)[:B].reshape(B, OUT_FEATURES)


def init_params(key):
    """Deterministic init matching PyTorch Linear shapes (stored transposed)."""
    k1, k2, k3, k4 = jax.random.split(key, 4)
    bound1 = 1.0 / (IN_FEATURES ** 0.5)
    bound2 = 1.0 / (HIDDEN ** 0.5)
    w1 = jax.random.uniform(k1, (IN_FEATURES, HIDDEN), jnp.float32, -bound1, bound1)
    b1 = jax.random.uniform(k2, (1, HIDDEN), jnp.float32, -bound1, bound1)
    w2 = jax.random.uniform(k3, (HIDDEN, OUT_FEATURES), jnp.float32, -bound2, bound2)
    b2 = jax.random.uniform(k4, (1, OUT_FEATURES), jnp.float32, -bound2, bound2)
    return w1, b1, w2, b2


def reference(x, w1, b1, w2, b2):
    h = jnp.maximum(x @ w1 + b1, 0.0)
    return jax.nn.sigmoid(h @ w2 + b2)


if __name__ == "__main__":
    key = jax.random.PRNGKey(0)
    kx, kp = jax.random.split(key)
    w1, b1, w2, b2 = init_params(kp)

    # bf16 layer-1 inputs + approx reciprocal -> relaxed (but still tight) tolerance.
    ATOL = RTOL = 5e-3

    # Small primary check (module's natural input shape (B, 12)); grid_b == 1.
    B = 8
    x = jax.random.normal(kx, (B, IN_FEATURES), jnp.float32)
    out = jax.block_until_ready(fully_connected_nn(x, w1, b1, w2, b2))
    ref = reference(x, w1, b1, w2, b2)
    assert out.shape == (B, OUT_FEATURES)
    assert jnp.allclose(out, ref, atol=ATOL, rtol=RTOL)

    # Multi-tile path: auto tile selection -> >=2 tiles (v7x megacore split) and a
    # ragged final block handled by Pallas partial-block semantics (no jnp.pad).
    B2 = 300
    x2 = jax.random.normal(jax.random.PRNGKey(1), (B2, IN_FEATURES), jnp.float32)
    out2 = jax.block_until_ready(fully_connected_nn(x2, w1, b1, w2, b2))
    ref2 = reference(x2, w1, b1, w2, b2)
    assert out2.shape == (B2, OUT_FEATURES)
    assert jnp.allclose(out2, ref2, atol=ATOL, rtol=RTOL)

    # Explicit small-tile path: grid_b == 3 with a partial last block.
    out3 = jax.block_until_ready(
        fully_connected_nn(x2, w1, b1, w2, b2, tile_b=128))
    assert out3.shape == (B2, OUT_FEATURES)
    assert jnp.allclose(out3, ref2, atol=ATOL, rtol=RTOL)

    print("KERNEL_OK")
</pallas_src>

<mosaic_0001>
module attributes {stable_mosaic.version = 11 : i64} {
  func.func @_mlp_kernel(%arg0: i32, %arg1: memref<12x128xbf16, #tpu.memory_space<vmem>>, %arg2: memref<128x12xbf16, #tpu.memory_space<vmem>>, %arg3: memref<128x1xf32, #tpu.memory_space<vmem>>, %arg4: memref<1x128xf32, #tpu.memory_space<vmem>>, %arg5: memref<1xf32, #tpu.memory_space<smem>>, %arg6: memref<1x1x128xf32, #tpu.memory_space<vmem>>) attributes {dimension_semantics = [#tpu.dimension_semantics<parallel>], iteration_bounds = array<i64: 1>, scalar_prefetch = 0 : i64, scratch_operands = 0 : i64, tpu.core_type = #tpu.core_type<tc>, window_params = [{transform_indices = @transform_0, window_bounds = array<i64: 12, 128>}, {pipeline_mode = #tpu.pipeline_mode<synchronous>, transform_indices = @transform_1, window_bounds = array<i64: 128, 12>}, {pipeline_mode = #tpu.pipeline_mode<synchronous>, transform_indices = @transform_2, window_bounds = array<i64: 128, 1>}, {pipeline_mode = #tpu.pipeline_mode<synchronous>, transform_indices = @transform_3, window_bounds = array<i64: 1, 128>}, {transform_indices = @transform_4, window_bounds = array<i64: 1>}, {transform_indices = @transform_5, window_bounds = array<i64: 1, 1, 128>}]} {
    %c0 = arith.constant 0 : index
    %c0_0 = arith.constant 0 : index
    %0 = vector.load %arg2[%c0, %c0_0] : memref<128x12xbf16, #tpu.memory_space<vmem>>, vector<128x12xbf16>
    %c0_1 = arith.constant 0 : index
    %c0_2 = arith.constant 0 : index
    %1 = vector.load %arg1[%c0_1, %c0_2] : memref<12x128xbf16, #tpu.memory_space<vmem>>, vector<12x128xbf16>
    %cst = arith.constant dense<0.000000e+00> : vector<128x128xf32>
    %2 = tpu.matmul %0, %1, %cst {dimension_numbers = #tpu.dot_dimension_numbers<[1], [0], [0], [1], [0, 0, 1, 1], [], []>} : vector<128x12xbf16>, vector<12x128xbf16>, vector<128x128xf32> -> vector<128x128xf32>
    %c0_3 = arith.constant 0 : index
    %c0_4 = arith.constant 0 : index
    %3 = vector.load %arg3[%c0_3, %c0_4] : memref<128x1xf32, #tpu.memory_space<vmem>>, vector<128x1xf32>
    %4 = vector.broadcast %3 : vector<128x1xf32> to vector<128x128xf32>
    %5 = arith.addf %2, %4 : vector<128x128xf32>
    %cst_5 = arith.constant 0.000000e+00 : f32
    %6 = vector.broadcast %cst_5 : f32 to vector<128x128xf32>
    %7 = arith.maximumf %5, %6 : vector<128x128xf32>
    %c0_6 = arith.constant 0 : index
    %c0_7 = arith.constant 0 : index
    %8 = vector.load %arg4[%c0_6, %c0_7] : memref<1x128xf32, #tpu.memory_space<vmem>>, vector<1x128xf32>
    %cst_8 = arith.constant dense<0.000000e+00> : vector<1x128xf32>
    %9 = tpu.matmul %8, %7, %cst_8 {dimension_numbers = #tpu.dot_dimension_numbers<[1], [0], [0], [1], [0, 0, 1, 1], [], []>} : vector<1x128xf32>, vector<128x128xf32>, vector<1x128xf32> -> vector<1x128xf32>
    %c0_9 = arith.constant 0 : index
    %10 = memref.load %arg5[%c0_9] : memref<1xf32, #tpu.memory_space<smem>>
    %11 = vector.broadcast %10 : f32 to vector<1x128xf32>
    %12 = arith.addf %9, %11 : vector<1x128xf32>
    %13 = math.absf %12 : vector<1x128xf32>
    %cst_10 = arith.constant 0.000000e+00 : f32
    %14 = vector.broadcast %cst_10 : f32 to vector<1x128xf32>
    %15 = arith.subf %14, %13 : vector<1x128xf32>
    %16 = math.exp %15 : vector<1x128xf32>
    %cst_11 = arith.constant 0.000000e+00 : f32
    %17 = vector.broadcast %cst_11 : f32 to vector<1x128xf32>
    %18 = arith.cmpf oge, %12, %17 : vector<1x128xf32>
    %cst_12 = arith.constant 1.000000e+00 : f32
    %19 = vector.broadcast %cst_12 : f32 to vector<1x128xf32>
    %20 = arith.select %18, %19, %16 : vector<1x128xi1>, vector<1x128xf32>
    %cst_13 = arith.constant 1.000000e+00 : f32
    %21 = vector.broadcast %cst_13 : f32 to vector<1x128xf32>
    %22 = arith.addf %21, %16 : vector<1x128xf32>
    %23 = tpu.reciprocal %22 {approx = true} : vector<1x128xf32> -> vector<1x128xf32>
    %24 = arith.mulf %20, %23 : vector<1x128xf32>
    %25 = vector.shape_cast %24 : vector<1x128xf32> to vector<1x1x128xf32>
    %c0_14 = arith.constant 0 : index
    %c0_15 = arith.constant 0 : index
    %c0_16 = arith.constant 0 : index
    %26 = vector.load %arg6[%c0_14, %c0_15, %c0_16] : memref<1x1x128xf32, #tpu.memory_space<vmem>>, vector<1x1x128xf32>
    tpu.vector_store %arg6[%c0_14, %c0_15, %c0_16], %25 {strides = array<i32>} : memref<1x1x128xf32, #tpu.memory_space<vmem>>, vector<1x1x128xf32>,
    return
  }
  func.func @transform_0(%arg0: i32) -> (i32, i32) {
    %c0_i32 = arith.constant 0 : i32
    %c0_i32_0 = arith.constant 0 : i32
    return %c0_i32, %arg0 : i32, i32
  }
  func.func @transform_1(%arg0: i32) -> (i32, i32) {
    %c0_i32 = arith.constant 0 : i32
    %c0_i32_0 = arith.constant 0 : i32
    %c0_i32_1 = arith.constant 0 : i32
    return %c0_i32, %c0_i32_0 : i32, i32
  }
  func.func @transform_2(%arg0: i32) -> (i32, i32) {
    %c0_i32 = arith.constant 0 : i32
    %c0_i32_0 = arith.constant 0 : i32
    %c0_i32_1 = arith.constant 0 : i32
    return %c0_i32, %c0_i32_0 : i32, i32
  }
  func.func @transform_3(%arg0: i32) -> (i32, i32) {
    %c0_i32 = arith.constant 0 : i32
    %c0_i32_0 = arith.constant 0 : i32
    %c0_i32_1 = arith.constant 0 : i32
    return %c0_i32, %c0_i32_0 : i32, i32
  }
  func.func @transform_4(%arg0: i32) -> i32 {
    %c0_i32 = arith.constant 0 : i32
    %c0_i32_0 = arith.constant 0 : i32
    return %c0_i32 : i32
  }
  func.func @transform_5(%arg0: i32) -> (i32, i32, i32) {
    %c0_i32 = arith.constant 0 : i32
    %c0_i32_0 = arith.constant 0 : i32
    %c0_i32_1 = arith.constant 0 : i32
    return %arg0, %c0_i32, %c0_i32_0 : i32, i32, i32
  }
}

</mosaic_0001>

<bundles_post_ra>
// kernel: tpu_custom_call.1
= control target key start
LH: loop header
LB: loop body
LE: loop exit
PB: predicated region body
PF: predicated region fallthrough
CT: control target
= control target key end

     0   :  { %vm207_vm0 = vcmask 1045504   ;;  %vm182_vm1 = vcmask 97280   ;;  %v586_v5 = vmov 0   ;;  %s730_s0 = inlined_call_operand.vmem [shape: bf16[12,8], index: 0, kind: input, shape index: {}]   ;;  %s731_s1 = inlined_call_operand.vmem [shape: bf16[128,12], index: 1, kind: input, shape index: {}]   ;;  %s732_s2 = inlined_call_operand.vmem [shape: f32[128,1], index: 2, kind: input, shape index: {}]   ;;  %s733_s3 = inlined_call_operand.vmem [shape: f32[1,128], index: 3, kind: input, shape index: {}]   ;;  %s734_s4 = inlined_call_operand.<no memory space> [shape: f32[1], index: 4, kind: input, shape index: {}]   ;;  %s735_s5 = inlined_call_operand.hbm [shape: f32[1,1,128], index: 5, kind: output, shape index: {}]  }
   0x1   :  { %v549_v0 = vld [vmem:[%s730_s0] sm:$0x3f]   ;;  %v551_v3 = vld [vmem:[%s731_s1 + $0x8] sm:$0xff]   ;;  %v552_v4 = vld [vmem:[%s731_s1 + $0x10] sm:$0xff]   ;;  %547 = vset.pattern.permute.xlu0 %v586_v5  ;;  %548 = vset.pattern.permute.xlu1 %v586_v5 }
   0x2   :  { %v550_v1 = vld [vmem:[%s731_s1] sm:$0xff]   ;;  %541 = vmatprep.subr.msk.bf16.mxu0 %vm207_vm0, %v549_v0  ;;  %v209_v2 = vsel %vm207_vm0, %v549_v0, 0  ;;  %v43_v7 = vld [vmem:[%s732_s2 + $0x10] sm:$0xff]  ;;  %v553_v8 = vld [vmem:[%s731_s1 + $0x18] sm:$0xff]  }
   0x3   :  { %465 = vmatpush3.bf16.msra.mxu0 %v209_v2  ;;  %466 = vmatprep.mubr.msk.bf16.mxu0 %vm182_vm1, %v550_v1  ;;  %v41_v6 = vld [vmem:[%s732_s2] sm:$0xff]  ;;  %v42_v10 = vld [vmem:[%s732_s2 + $0x8] sm:$0xff]  ;;  %v44_v11 = vld [vmem:[%s732_s2 + $0x18] sm:$0xff] }
   0x4   :  { %59 = vperm.xlu0 %547, %v41_v6   ;;  %69 = vperm.xlu1 %548, %v43_v7   ;;  %v554_v9 = vld [vmem:[%s731_s1 + $0x20] sm:$0xff]  }
   0x6   :  { %467 = vmatmul.mubr.msk.bf16.vlgmr.msra.gmra.mrb[0].mxu0 %vm182_vm1, %v551_v3 }
   0x7   :  { %470 = vmatprep.mubr.msk.bf16.mxu0 %vm182_vm1, %v552_v4 }
   0x8   :  { %64 = vperm.xlu0 %547, %v42_v10  }
   0xe   :  { %471 = vmatmul.mubr.msk.bf16.gmra.mrb[4].mxu0 %vm182_vm1, %v553_v8 }
   0xf   :  { %11 = vsyncpa [#allocation4], 0  ;;  %474 = vmatprep.mubr.msk.bf16.mxu0 %vm182_vm1, %v554_v9  ;;  %74 = vperm.xlu1 %548, %v44_v11   ;;  %v45_v12 = vld [vmem:[%s732_s2 + $0x20] sm:$0xff]  ;;  %v46_v13 = vld [vmem:[%s732_s2 + $0x28] sm:$0xff]  ;;  %v587_v27 = vmov 0.0|0.0   ;;  %vm588_vm2 = vmmov 0  }
  0x10   :  { %v555_v14 = vld [vmem:[%s731_s1 + $0x28] sm:$0xff]   ;;  %79 = vperm.xlu0 %547, %v45_v12   ;;  %v556_v15 = vld [vmem:[%s731_s1 + $0x30] sm:$0xff]   ;;  %v48_v17 = vld [vmem:[%s732_s2 + $0x38] sm:$0xff]  ;;  %517 = vmatprep.subr.bf16.mxu1 %v587_v27  ;;  %v589_v28 = vmov 0.0   ;;  %s590_s18 = smov [#allocation3]  }
  0x11   :  { %v47_v16 = vld [vmem:[%s732_s2 + $0x30] sm:$0xff]  ;;  %v49_v18 = vld [vmem:[%s732_s2 + $0x40] sm:$0xff]  ;;  %v50_v19 = vld [vmem:[%s732_s2 + $0x48] sm:$0xff]  ;;  %514 = vmatprep.mubr.msk.f32.mxu1 %vm588_vm2, %v589_v28  ;;  %s413_s19 = sshll.u32 %s590_s18, 4  ;;  %s414_s19 = int_to_ptr.vmem [resolvable:$true] %s413_s19 }
  0x12   :  { %v557_v20 = vld [vmem:[%s731_s1 + $0x38] sm:$0xff]   ;;  %v51_v21 = vld [vmem:[%s732_s2 + $0x50] sm:$0xff]  ;;  %v53_v23 = vld [vmem:[%s732_s2 + $0x60] sm:$0xff]  ;;  %p567_p1 = scmp.lt.s32.totalorder %s414_s19, %s414_s19 }
  0x13   :  { %84 = vperm.xlu1 %548, %v46_v13   ;;  %v52_v22 = vld [vmem:[%s732_s2 + $0x58] sm:$0xff]  ;;  %v54_v24 = vld [vmem:[%s732_s2 + $0x68] sm:$0xff]  ;;  %v55_v25 = vld [vmem:[%s732_s2 + $0x70] sm:$0xff] }
  0x14   :  { %89 = vperm.xlu0 %547, %v47_v16   ;;  %v56_v26 = vld [vmem:[%s732_s2 + $0x78] sm:$0xff] }
  0x16   :  { %475 = vmatmul.mubr.msk.bf16.gmra.mrb[8].mxu0 %vm182_vm1, %v555_v14 }
  0x17   :  { %478 = vmatprep.mubr.msk.bf16.mxu0 %vm182_vm1, %v556_v15  ;;  %94 = vperm.xlu1 %548, %v48_v17  }
  0x18   :  { %99 = vperm.xlu0 %547, %v49_v18  }
  0x1b   :  { %104 = vperm.xlu1 %548, %v50_v19  }
  0x1c   :  { %109 = vperm.xlu0 %547, %v51_v21  }
  0x1e   :  { %479 = vmatmul.mubr.msk.bf16.gmra.mrb[12].mxu0 %vm182_vm1, %v557_v20 }
  0x1f   :  { %114 = vperm.xlu1 %548, %v52_v22  }
  0x20   :  { %119 = vperm.xlu0 %547, %v53_v23  }
  0x23   :  { %124 = vperm.xlu1 %548, %v54_v24  }
  0x24   :  { %129 = vperm.xlu0 %547, %v55_v25  }
  0x27   :  { %134 = vperm.xlu1 %548, %v56_v26  }
  0x83   :  { %v60_v29 = vpop.permute.xlu0 %59  ;;  %v70_v30 = vpop.permute.xlu1 %69 }
  0x87   :  { %v65_v31 = vpop.permute.xlu0 %64 }
  0x8e   :  { %v75_v32 = vpop.permute.xlu1 %74 }
  0x8f   :  { %v80_v33 = vpop.permute.xlu0 %79 }
  0x92   :  { %v85_v34 = vpop.permute.xlu1 %84 }
  0x93   :  { %v90_v35 = vpop.permute.xlu0 %89 }
  0x96   :  { %v95_v39 = vpop.permute.xlu1 %94 }
  0x97   :  { %v100_v47 = vpop.permute.xlu0 %99 }
  0x9a   :  { %v105_v51 = vpop.permute.xlu1 %104 }
  0x9b   :  { %v110_v60 = vpop.permute.xlu0 %109 }
  0x9e   :  { %v115_v0 = vpop.permute.xlu1 %114 }
  0x9f   :  { %v120_v8 = vpop.permute.xlu0 %119 }
  0xa2   :  { %v125_v13 = vpop.permute.xlu1 %124 }
  0xa3   :  { %v130_v20 = vpop.permute.xlu0 %129 }
  0xa6   :  { %v135_v25 = vpop.permute.xlu1 %134 }
  0xd9   :  { %v468_v36 = vpop.f32.mrb[0].mxu0 }
  0xda   :  { %v254_v37 = vadd.f32 %v468_v36, %v70_v30  ;;  %v245_v38 = vpop.f32.mrb[1].mxu0 }
  0xdb   :  { %v246_v40 = vadd.f32 %v245_v38, %v60_v29  ;;  %v469_v41 = vpop.f32.mrb[2].mxu0  ;;  %v324_v38 = vld [vmem:[%s733_s3] sm:$0x1]  ;;  %s562_s3 = scalar_lea.vmem %s414_s19, 16 }
  0xdc   :  { %v257_v42 = vadd.f32 %v469_v41, %v75_v32  ;;  %v248_v43 = vpop.f32.mrb[3].mxu0  ;;  %v310_v45 = vmax.f32 %v254_v37, 0.0  ;;  %p563_p0 = scmp.ne.s32.totalorder %s414_s19, %s562_s3 }
  0xdd   :  { %v249_v44 = vadd.f32 %v248_v43, %v65_v31  ;;  %v308_v48 = vmax.f32 %v246_v40, 0.0 }
  0xde   :  { %v311_v46 = vmax.f32 %v257_v42, 0.0 }
  0xdf   :  { %v309_v49 = vmax.f32 %v249_v44, 0.0 }
  0xe0   :  { %v521_v50 = vpack.c.bf16 %v311_v46, %v310_v45 }
  0xe1   :  { %v472_v52 = vpop.f32.mrb[4].mxu0  ;;  %v518_v53 = vpack.c.bf16 %v309_v49, %v308_v48 }
  0xe2   :  { %v270_v54 = vadd.f32 %v472_v52, %v90_v35  ;;  %v261_v55 = vpop.f32.mrb[5].mxu0 }
  0xe3   :  { %v262_v56 = vadd.f32 %v261_v55, %v80_v33  ;;  %v473_v57 = vpop.f32.mrb[6].mxu0  ;;  %519 = vmatpush3.bf16.msra.mxu1 %v518_v53 }
  0xe4   :  { %v273_v58 = vadd.f32 %v473_v57, %v95_v39  ;;  %v264_v59 = vpop.f32.mrb[7].mxu0  ;;  %520 = vmatprep.subr.bf16.mxu1 %v587_v27  ;;  %v314_v62 = vmax.f32 %v270_v54, 0.0  ;;  %v326_v39 = vstv %s734_s4  ;;  %s566_s4 = scalar_lea.vmem %s414_s19, 32 }
  0xe5   :  { %v265_v61 = vadd.f32 %v264_v59, %v85_v34  ;;  %v312_v1 = vmax.f32 %v262_v56, 0.0  ;;  %p568_p2 = scmp.lt.s32.totalorder %s566_s4, %s562_s3 }
  0xe6   :  { %v315_v63 = vmax.f32 %v273_v58, 0.0 }
  0xe7   :  { %v313_v2 = vmax.f32 %v265_v61, 0.0  ;;  %522 = vmatpush3.bf16.msra.mxu1 %v521_v50  ;;  %p569_p3 = por %p568_p2, %p567_p1 }
  0xe8   :  { %v527_v3 = vpack.c.bf16 %v315_v63, %v314_v62  ;;  %523 = vmatprep.subr.bf16.mxu1 %v587_v27 }
  0xe9   :  { %v524_v4 = vpack.c.bf16 %v313_v2, %v312_v1  ;;  %v476_v5 = vpop.f32.mrb[8].mxu0  ;;  %p570_p4 = pnand %p569_p3, %p563_p0 }
  0xea   :  { %v286_v6 = vadd.f32 %v476_v5, %v110_v60  ;;  %v277_v7 = vpop.f32.mrb[9].mxu0 }
  0xeb   :  { %v278_v9 = vadd.f32 %v277_v7, %v100_v47  ;;  %v477_v10 = vpop.f32.mrb[10].mxu0  ;;  %525 = vmatpush3.bf16.msra.mxu1 %v524_v4 }
  0xec   :  { %v289_v11 = vadd.f32 %v477_v10, %v115_v0  ;;  %v280_v12 = vpop.f32.mrb[11].mxu0  ;;  %526 = vmatprep.subr.bf16.mxu1 %v587_v27  ;;  %v318_v15 = vmax.f32 %v286_v6, 0.0 }
  0xed   :  { %v281_v14 = vadd.f32 %v280_v12, %v105_v51  ;;  %v316_v17 = vmax.f32 %v278_v9, 0.0 }
  0xee   :  { %v319_v16 = vmax.f32 %v289_v11, 0.0 }
  0xef   :  { %v317_v18 = vmax.f32 %v281_v14, 0.0  ;;  %528 = vmatpush3.bf16.msra.mxu1 %v527_v3 }
  0xf0   :  { %v533_v19 = vpack.c.bf16 %v319_v16, %v318_v15  ;;  %529 = vmatprep.subr.bf16.mxu1 %v587_v27 }
  0xf1   :  { %v530_v21 = vpack.c.bf16 %v317_v18, %v316_v17  ;;  %v480_v22 = vpop.f32.mrb[12].mxu0 }
  0xf2   :  { %v302_v23 = vadd.f32 %v480_v22, %v130_v20  ;;  %v293_v24 = vpop.f32.mrb[13].mxu0 }
  0xf3   :  { %v294_v26 = vadd.f32 %v293_v24, %v120_v8  ;;  %v481_v28 = vpop.f32.mrb[14].mxu0  ;;  %531 = vmatpush3.bf16.msra.mxu1 %v530_v21 }
  0xf4   :  { %v305_v29 = vadd.f32 %v481_v28, %v135_v25  ;;  %v296_v30 = vpop.f32.mrb[15].mxu0  ;;  %532 = vmatprep.subr.bf16.mxu1 %v587_v27  ;;  %v322_v32 = vmax.f32 %v302_v23, 0.0 }
  0xf5   :  { %v297_v31 = vadd.f32 %v296_v30, %v125_v13  ;;  %v320_v34 = vmax.f32 %v294_v26, 0.0 }
  0xf6   :  { %v323_v33 = vmax.f32 %v305_v29, 0.0 }
  0xf7   :  { %v321_v35 = vmax.f32 %v297_v31, 0.0  ;;  %534 = vmatpush3.bf16.msra.mxu1 %v533_v19 }
  0xf8   :  { %v539_v36 = vpack.c.bf16 %v323_v33, %v322_v32  ;;  %535 = vmatprep.subr.bf16.mxu1 %v587_v27 }
  0xf9   :  { %v536_v37 = vpack.c.bf16 %v321_v35, %v320_v34 }
  0xfb   :  { %537 = vmatpush3.bf16.msra.mxu1 %v536_v37 }
  0xfc   :  { %538 = vmatprep.subr.bf16.mxu1 %v587_v27 }
  0xff   :  { %540 = vmatpush3.bf16.msra.mxu1 %v539_v36 }
 0x102   :  { %515 = vmatmul.mubr.f32.vlgmr.msra.gmra.mrb[0].mxu1 %v324_v38 }
 0x1d5   :  { %v393_v40 = vpop.f32.mrb[0].mxu1 }
 0x1d6   :  { %v394_v41 = vadd.f32 %v393_v40, %v326_v39  ;;  %v516_v42 = vpop.f32.mrb[1].mxu1 }
 0x1d8   :  { %v397_v43 = vand.u32 2147483647, %v394_v41  ;;  %vm401_vm3 = vcmp.ge.f32.partialorder %v394_v41, 0.0 }
 0x1da   :  { %v398_v44 = vsub.f32 0.0, %v397_v43 }
 0x1dc   :  { %v399_v45 = vmul.f32 1.442695, %v398_v44 }
 0x1de   :  { %558 = vpow2.f32 %v399_v45 }
 0x1e8   :  { %v559_v46 = vpop.eup %558 }
 0x1e9   :  { %v403_v47 = vadd.f32 1.0, %v559_v46  ;;  %v402_v48 = vsel %vm401_vm3, 1.0, %v559_v46 }
 0x1eb   :  { %560 = vrcp.f32 %v403_v47 }
 0x1f5   :  { %v561_v27 = vpop.eup %560 }
 0x1f6   :  { %v405_v49 = vmul.f32 %v561_v27, %v402_v48 }
 0x1f8   :  { %406 = vst [vmem:[#allocation3] sm:$0x1] %v405_v49 }
 0x1f9   :  { %573 = shalt.err (!%p570_p4)
}
 0x1fa   :  { %s574_s22 = scalar_lea.hbm %s735_s5, 16 }
 0x1fb   :  { %p575_p5 = scmp.ne.s32.totalorder %s735_s5, %s574_s22  ;;  %p578_p6 = scmp.lt.u32.totalorder %s574_s22, %s735_s5 }
 0x1fd   :  { %p580_p7 = pnand %p578_p6, %p575_p5 }
 0x1ff   :  { %583 = shalt.err (!%p580_p7)
}
 0x200   :  { %416 = dma.vmem_to_hbm [thread:$0]  %s414_s19, 16, %s735_s5, [#allocation4]  }
 0x201   :  { %584 = dma.done.wait [#allocation4], 16  }
 0x202   :  { %585 = vsyncadd [#allocation4], 4294967280 }
 0x203   :  { %420 = vsyncpa [#allocation4], 1 }

</bundles_post_ra>
